<compile_context>
chip_gen: v7x
topology: tpu7x:2x2x1
jax: 0.10.0
libtpu: 0.0.40
codegen_flags: <defaults>
</compile_context>

<pallas_src>
import jax
import jax.numpy as jnp
from jax.experimental import pallas as pl
from jax.experimental.pallas import tpu as pltpu

_LANE = 128
_SUBLANE = 8
_MAX_BM = 32768   # double-buffered obs+out tiles stay < ~20 MiB even here


def _round_up(x, m):
    return ((x + m - 1) // m) * m


def _pick_bm(B, block_rows):
    """Batch tile (lane axis of the output). Multiple of 128; >=2 grid steps
    when the batch is big enough (v7x megacore split)."""
    block_rows = min(block_rows, _MAX_BM)
    bm = min(block_rows, _round_up(B, _LANE))
    bm = max(_LANE, (bm // _LANE) * _LANE)
    if pl.cdiv(B, bm) < 2 and B > 2 * _LANE:
        bm = _round_up(pl.cdiv(B, 2), _LANE)      # split into 2 steps for v7x
    return bm


def actor_kernel(obs_ref, w1_ref, b1_ref, w2_ref, b2_ref, wpi_ref, bpi_ref,
                 out_ref):
    # obs tile (bm, obs_dim) f32.  Cast to bf16 in-kernel (keep the HBM copy
    # f32), then run the whole MLP transposed so batch sits on the lane axis.
    obs_bf = obs_ref[...].astype(jnp.bfloat16)

    # fc1:  h^T = W1 @ obs^T  -> (hidden, bm).  Same "dot(a, b.T)" pattern as
    # the flash-attention reference kernels; f32 accumulation on the MXU.
    h = jnp.dot(w1_ref[...], obs_bf.T, preferred_element_type=jnp.float32)
    h = jnp.maximum(h + b1_ref[...], 0.0)          # bias (hidden,1), f32 VPU

    # fc2 + ReLU
    h = jnp.dot(w2_ref[...], h.astype(jnp.bfloat16),
                preferred_element_type=jnp.float32)
    h = jnp.maximum(h + b2_ref[...], 0.0)

    # all policy heads fused: logits^T = Wpi @ h^T -> (out_rows, bm)
    logits = jnp.dot(wpi_ref[...], h.astype(jnp.bfloat16),
                     preferred_element_type=jnp.float32)
    out_ref[...] = logits + bpi_ref[...]


def _forward_jax(obs, params, act_shape):
    """Plain-XLA forward with the same bf16/f32 numerics as the kernel.
    Used as the tiny-batch fast path and as the test reference."""
    w1, b1, w2, b2, wpi, bpi = params
    x = obs.astype(jnp.float32)
    h = jnp.dot(x.astype(jnp.bfloat16), w1.T,
                preferred_element_type=jnp.float32) + b1[:, 0]
    h = jnp.maximum(h, 0.0)
    h = jnp.dot(h.astype(jnp.bfloat16), w2.T,
                preferred_element_type=jnp.float32) + b2[:, 0]
    h = jnp.maximum(h, 0.0)
    out = jnp.dot(h.astype(jnp.bfloat16), wpi.T,
                  preferred_element_type=jnp.float32) + bpi[:, 0]
    logits, off = [], 0
    for a in act_shape:
        logits.append(out[:, off:off + a])
        off += a
    return logits


def actor_forward(obs, params, act_shape, *, block_rows=2048, use_pallas=None,
                  pallas_min_batch=256):
    """ActorBase forward. Returns a list of per-head logits, each (B, act_i) f32."""
    w1, b1, w2, b2, wpi, bpi = params
    B, obs_dim = obs.shape
    hidden = w1.shape[0]
    out_rows = wpi.shape[0]                 # sum(act_shape) rounded up to 8
    total_act = sum(act_shape)
    assert out_rows >= total_act

    # Tiny batches: Pallas launch/grid overhead dwarfs a 3-layer 64-wide MLP.
    if use_pallas is None:
        use_pallas = B >= pallas_min_batch
    if not use_pallas:
        return _forward_jax(obs, params, act_shape)

    obs = obs.astype(jnp.float32)           # matches obs.to(torch.float32)

    bm = _pick_bm(B, block_rows)
    grid = (pl.cdiv(B, bm),)                # partial tail tile handled by Pallas

    flops = 2 * B * (obs_dim * hidden + hidden * hidden + hidden * out_rows)
    w_bytes = ((w1.size + w2.size + wpi.size) * 2
               + (b1.size + b2.size + bpi.size) * 4)
    bytes_accessed = B * obs_dim * 4 + out_rows * B * 4 + w_bytes

    # Explicit scoped-VMEM budget with headroom (double-buffered obs/out tiles
    # + resident weights); capped at 32 MiB so it is safe on every generation
    # (v5e default is only 16 MiB, v7x physical VMEM is 64 MiB).
    tile_bytes = bm * obs_dim * 4 + out_rows * bm * 4
    vmem_limit = int(min(32 << 20,
                         max(16 << 20, 4 * tile_bytes + 2 * w_bytes + (2 << 20))))

    const = lambda i: (0, 0)                # weights/biases: resident block

    out_t = pl.pallas_call(
        actor_kernel,
        out_shape=jax.ShapeDtypeStruct((out_rows, B), jnp.float32),
        grid=grid,
        in_specs=[
            pl.BlockSpec((bm, obs_dim), lambda i: (i, 0)),   # obs tile
            pl.BlockSpec((hidden, obs_dim), const),          # W1 (resident, bf16)
            pl.BlockSpec((hidden, 1), const),                # b1
            pl.BlockSpec((hidden, hidden), const),           # W2
            pl.BlockSpec((hidden, 1), const),                # b2
            pl.BlockSpec((out_rows, hidden), const),         # Wpi (all heads)
            pl.BlockSpec((out_rows, 1), const),              # bpi
        ],
        out_specs=pl.BlockSpec((out_rows, bm), lambda i: (0, i)),  # batch on lanes
        compiler_params=pltpu.CompilerParams(
            dimension_semantics=("parallel",),
            vmem_limit_bytes=vmem_limit),
        cost_estimate=pl.CostEstimate(flops=flops, transcendentals=0,
                                      bytes_accessed=bytes_accessed),
    )(obs, w1, b1, w2, b2, wpi, bpi)

    # Split concatenated head rows back into a list of (B, act_i) blocks
    # (tiny wrapper-side slices/transposes; padded rows are never read).
    logits, off = [], 0
    for a in act_shape:
        logits.append(out_t[off:off + a, :].T)
        off += a
    return logits


def init_params(key, obs_dim, act_shape, hidden=64):
    """Deterministic init mirroring the PyTorch module.

    kaiming_normal_(mode='fan_out', nonlinearity='relu'): std = sqrt(2/fan_out).
    Biases use PyTorch's default Linear init: U(-1/sqrt(in), 1/sqrt(in)).
    Weights are kept in torch (out, in) orientation, bf16; head weights/biases
    are zero-padded along the output axis to a multiple of 8 sublanes.
    """
    total_act = sum(act_shape)
    out_rows = _round_up(total_act, _SUBLANE)
    k = jax.random.split(key, 6)

    def kaiming(key, out_dim, in_dim):
        std = (2.0 / out_dim) ** 0.5
        return std * jax.random.normal(key, (out_dim, in_dim), jnp.float32)

    def bias(key, in_dim, out_dim):
        bound = 1.0 / (in_dim ** 0.5)
        return jax.random.uniform(key, (out_dim, 1), jnp.float32,
                                  minval=-bound, maxval=bound)

    w1 = kaiming(k[0], hidden, obs_dim).astype(jnp.bfloat16)
    b1 = bias(k[1], obs_dim, hidden)
    w2 = kaiming(k[2], hidden, hidden).astype(jnp.bfloat16)
    b2 = bias(k[3], hidden, hidden)

    kw = jax.random.split(k[4], len(act_shape))
    kb = jax.random.split(k[5], len(act_shape))
    wpi_parts = [kaiming(kw[i], a, hidden) for i, a in enumerate(act_shape)]
    bpi_parts = [bias(kb[i], hidden, a) for i, a in enumerate(act_shape)]
    pad = out_rows - total_act
    wpi_parts.append(jnp.zeros((pad, hidden), jnp.float32))
    bpi_parts.append(jnp.zeros((pad, 1), jnp.float32))
    wpi = jnp.concatenate(wpi_parts, axis=0).astype(jnp.bfloat16)
    bpi = jnp.concatenate(bpi_parts, axis=0)
    return w1, b1, w2, b2, wpi, bpi


if __name__ == "__main__":
    key = jax.random.PRNGKey(0)
    obs_dim = 16
    act_shape = (4, 6)          # two action heads

    k_params, k_small, k_big = jax.random.split(key, 3)
    params = init_params(k_params, obs_dim, act_shape)

    # --- tiny acting batch: dispatched to the plain-JAX fast path ---
    obs_small = jax.random.normal(k_small, (8, obs_dim), jnp.float32)
    small = actor_forward(obs_small, params, act_shape)
    small = [jax.block_until_ready(x) for x in small]
    for x, a in zip(small, act_shape):
        assert x.shape == (8, a), x.shape

    # --- Pallas kernel path ---
    def check(batch, block_rows):
        obs = jax.random.normal(jax.random.fold_in(k_big, batch),
                                (batch, obs_dim), jnp.float32)
        got = actor_forward(obs, params, act_shape, block_rows=block_rows,
                            use_pallas=True)
        got = [jax.block_until_ready(x) for x in got]
        want = _forward_jax(obs, params, act_shape)
        for g, w, a in zip(got, want, act_shape):
            assert g.shape == (batch, a), g.shape
            assert jnp.allclose(g, w, atol=1e-2, rtol=1e-2), (
                float(jnp.max(jnp.abs(g - w))))

    # batch fits in one tile -> forced 2-step grid (v7x megacore), masked tail
    check(384, 2048)
    # multi-step grid, batch not a multiple of the tile (48 masked lanes at end)
    check(4000, 2048)

    print("KERNEL_OK")
</pallas_src>

<mosaic_0001>
module attributes {stable_mosaic.version = 11 : i64} {
  func.func @actor_kernel(%arg0: i32, %arg1: memref<256x16xf32, #tpu.memory_space<vmem>>, %arg2: memref<64x16xbf16, #tpu.memory_space<vmem>>, %arg3: memref<64x1xf32, #tpu.memory_space<vmem>>, %arg4: memref<64x64xbf16, #tpu.memory_space<vmem>>, %arg5: memref<64x1xf32, #tpu.memory_space<vmem>>, %arg6: memref<16x64xbf16, #tpu.memory_space<vmem>>, %arg7: memref<16x1xf32, #tpu.memory_space<vmem>>, %arg8: memref<16x256xf32, #tpu.memory_space<vmem>>) attributes {dimension_semantics = [#tpu.dimension_semantics<parallel>], iteration_bounds = array<i64: 2>, scalar_prefetch = 0 : i64, scratch_operands = 0 : i64, tpu.core_type = #tpu.core_type<tc>, window_params = [{transform_indices = @transform_0, window_bounds = array<i64: 256, 16>}, {pipeline_mode = #tpu.pipeline_mode<synchronous>, transform_indices = @transform_1, window_bounds = array<i64: 64, 16>}, {pipeline_mode = #tpu.pipeline_mode<synchronous>, transform_indices = @transform_2, window_bounds = array<i64: 64, 1>}, {pipeline_mode = #tpu.pipeline_mode<synchronous>, transform_indices = @transform_3, window_bounds = array<i64: 64, 64>}, {pipeline_mode = #tpu.pipeline_mode<synchronous>, transform_indices = @transform_4, window_bounds = array<i64: 64, 1>}, {pipeline_mode = #tpu.pipeline_mode<synchronous>, transform_indices = @transform_5, window_bounds = array<i64: 16, 64>}, {pipeline_mode = #tpu.pipeline_mode<synchronous>, transform_indices = @transform_6, window_bounds = array<i64: 16, 1>}, {transform_indices = @transform_7, window_bounds = array<i64: 16, 256>}]} {
    %c0 = arith.constant 0 : index
    %c0_0 = arith.constant 0 : index
    %0 = vector.load %arg1[%c0, %c0_0] : memref<256x16xf32, #tpu.memory_space<vmem>>, vector<256x16xf32>
    %1 = arith.truncf %0 : vector<256x16xf32> to vector<256x16xbf16>
    %c0_1 = arith.constant 0 : index
    %c0_2 = arith.constant 0 : index
    %2 = vector.load %arg2[%c0_1, %c0_2] : memref<64x16xbf16, #tpu.memory_space<vmem>>, vector<64x16xbf16>
    %3 = tpu.transpose %1, [1, 0] : vector<256x16xbf16> -> vector<16x256xbf16>
    %cst = arith.constant dense<0.000000e+00> : vector<64x256xf32>
    %4 = tpu.matmul %2, %3, %cst {dimension_numbers = #tpu.dot_dimension_numbers<[1], [0], [0], [1], [0, 0, 1, 1], [], []>} : vector<64x16xbf16>, vector<16x256xbf16>, vector<64x256xf32> -> vector<64x256xf32>
    %c0_3 = arith.constant 0 : index
    %c0_4 = arith.constant 0 : index
    %5 = vector.load %arg3[%c0_3, %c0_4] : memref<64x1xf32, #tpu.memory_space<vmem>>, vector<64x1xf32>
    %6 = vector.broadcast %5 : vector<64x1xf32> to vector<64x256xf32>
    %7 = arith.addf %4, %6 : vector<64x256xf32>
    %cst_5 = arith.constant 0.000000e+00 : f32
    %8 = vector.broadcast %cst_5 : f32 to vector<64x256xf32>
    %9 = arith.maximumf %7, %8 : vector<64x256xf32>
    %c0_6 = arith.constant 0 : index
    %c0_7 = arith.constant 0 : index
    %10 = vector.load %arg4[%c0_6, %c0_7] : memref<64x64xbf16, #tpu.memory_space<vmem>>, vector<64x64xbf16>
    %11 = arith.truncf %9 : vector<64x256xf32> to vector<64x256xbf16>
    %cst_8 = arith.constant dense<0.000000e+00> : vector<64x256xf32>
    %12 = tpu.matmul %10, %11, %cst_8 {dimension_numbers = #tpu.dot_dimension_numbers<[1], [0], [0], [1], [0, 0, 1, 1], [], []>} : vector<64x64xbf16>, vector<64x256xbf16>, vector<64x256xf32> -> vector<64x256xf32>
    %c0_9 = arith.constant 0 : index
    %c0_10 = arith.constant 0 : index
    %13 = vector.load %arg5[%c0_9, %c0_10] : memref<64x1xf32, #tpu.memory_space<vmem>>, vector<64x1xf32>
    %14 = vector.broadcast %13 : vector<64x1xf32> to vector<64x256xf32>
    %15 = arith.addf %12, %14 : vector<64x256xf32>
    %cst_11 = arith.constant 0.000000e+00 : f32
    %16 = vector.broadcast %cst_11 : f32 to vector<64x256xf32>
    %17 = arith.maximumf %15, %16 : vector<64x256xf32>
    %c0_12 = arith.constant 0 : index
    %c0_13 = arith.constant 0 : index
    %18 = vector.load %arg6[%c0_12, %c0_13] : memref<16x64xbf16, #tpu.memory_space<vmem>>, vector<16x64xbf16>
    %19 = arith.truncf %17 : vector<64x256xf32> to vector<64x256xbf16>
    %cst_14 = arith.constant dense<0.000000e+00> : vector<16x256xf32>
    %20 = tpu.matmul %18, %19, %cst_14 {dimension_numbers = #tpu.dot_dimension_numbers<[1], [0], [0], [1], [0, 0, 1, 1], [], []>} : vector<16x64xbf16>, vector<64x256xbf16>, vector<16x256xf32> -> vector<16x256xf32>
    %c0_15 = arith.constant 0 : index
    %c0_16 = arith.constant 0 : index
    %21 = vector.load %arg7[%c0_15, %c0_16] : memref<16x1xf32, #tpu.memory_space<vmem>>, vector<16x1xf32>
    %22 = vector.broadcast %21 : vector<16x1xf32> to vector<16x256xf32>
    %23 = arith.addf %20, %22 : vector<16x256xf32>
    %c0_17 = arith.constant 0 : index
    %c0_18 = arith.constant 0 : index
    %24 = vector.load %arg8[%c0_17, %c0_18] : memref<16x256xf32, #tpu.memory_space<vmem>>, vector<16x256xf32>
    tpu.vector_store %arg8[%c0_17, %c0_18], %23 {strides = array<i32>} : memref<16x256xf32, #tpu.memory_space<vmem>>, vector<16x256xf32>,
    return
  }
  func.func @transform_0(%arg0: i32) -> (i32, i32) {
    %c0_i32 = arith.constant 0 : i32
    %c0_i32_0 = arith.constant 0 : i32
    return %arg0, %c0_i32 : i32, i32
  }
  func.func @transform_1(%arg0: i32) -> (i32, i32) {
    %c0_i32 = arith.constant 0 : i32
    %c0_i32_0 = arith.constant 0 : i32
    %c0_i32_1 = arith.constant 0 : i32
    return %c0_i32, %c0_i32_0 : i32, i32
  }
  func.func @transform_2(%arg0: i32) -> (i32, i32) {
    %c0_i32 = arith.constant 0 : i32
    %c0_i32_0 = arith.constant 0 : i32
    %c0_i32_1 = arith.constant 0 : i32
    return %c0_i32, %c0_i32_0 : i32, i32
  }
  func.func @transform_3(%arg0: i32) -> (i32, i32) {
    %c0_i32 = arith.constant 0 : i32
    %c0_i32_0 = arith.constant 0 : i32
    %c0_i32_1 = arith.constant 0 : i32
    return %c0_i32, %c0_i32_0 : i32, i32
  }
  func.func @transform_4(%arg0: i32) -> (i32, i32) {
    %c0_i32 = arith.constant 0 : i32
    %c0_i32_0 = arith.constant 0 : i32
    %c0_i32_1 = arith.constant 0 : i32
    return %c0_i32, %c0_i32_0 : i32, i32
  }
  func.func @transform_5(%arg0: i32) -> (i32, i32) {
    %c0_i32 = arith.constant 0 : i32
    %c0_i32_0 = arith.constant 0 : i32
    %c0_i32_1 = arith.constant 0 : i32
    return %c0_i32, %c0_i32_0 : i32, i32
  }
  func.func @transform_6(%arg0: i32) -> (i32, i32) {
    %c0_i32 = arith.constant 0 : i32
    %c0_i32_0 = arith.constant 0 : i32
    %c0_i32_1 = arith.constant 0 : i32
    return %c0_i32, %c0_i32_0 : i32, i32
  }
  func.func @transform_7(%arg0: i32) -> (i32, i32) {
    %c0_i32 = arith.constant 0 : i32
    %c0_i32_0 = arith.constant 0 : i32
    return %c0_i32, %arg0 : i32, i32
  }
}

</mosaic_0001>

<bundles_post_ra>
// kernel: tpu_custom_call.1
= control target key start
LH: loop header
LB: loop body
LE: loop exit
PB: predicated region body
PF: predicated region fallthrough
CT: control target
= control target key end

     0   :  { %12 = vsyncpa [#allocation3], 0  ;;  %s1429_s0 = inlined_call_operand.vmem [shape: f32[384,16], index: 0, kind: input, shape index: {}]   ;;  %s1430_s1 = inlined_call_operand.vmem [shape: bf16[64,16], index: 1, kind: input, shape index: {}]   ;;  %s1431_s2 = inlined_call_operand.vmem [shape: f32[64,1], index: 2, kind: input, shape index: {}]   ;;  %s1432_s3 = inlined_call_operand.vmem [shape: bf16[64,64], index: 3, kind: input, shape index: {}]   ;;  %s1433_s4 = inlined_call_operand.vmem [shape: f32[64,1], index: 4, kind: input, shape index: {}]   ;;  %s1434_s5 = inlined_call_operand.vmem [shape: bf16[16,64], index: 5, kind: input, shape index: {}]   ;;  %s1435_s6 = inlined_call_operand.vmem [shape: f32[16,1], index: 6, kind: input, shape index: {}]   ;;  %s1436_s7 = inlined_call_operand.hbm [shape: f32[16,384], index: 7, kind: output, shape index: {}]  }
   0x1   :  { %14 = vsyncpa [#allocation3 + $0x1], 0  ;;  %s1155_s24 = smov 0   ;;  %s1157_s25 = smov 0  }
   0x2   :  { %s1159_s26 = smov 0   ;;  %s1161_s27 = smov 0  }
   0x3 LB: > { %s1176_s28 = sadd.s32 4294967295, %s1109_s27   ;;  %s925_s29 = sadd.s32 4294967294, %s1109_s27   ;;  %s1109_s27 = sphi %s1161_s27, %s1442_s27   ;;  %s1105_s26 = sphi %s1159_s26, %s1441_s26   ;;  %s1101_s25 = sphi %s1157_s25, %s1440_s25   ;;  %s1097_s24 = sphi %s1155_s24, %s1439_s24  }
   0x4   : > { %s1180_s30 = sadd.s32 1, %s1109_s27   ;;  %s179_s8 = sadd.s32 1, %s1105_s26 }
   0x5   : > { %s176_s9 = ssub.s32 %s1109_s27, %s1180_s30  ;;  %p189_p0 = scmp.ne.s32.totalorder %s1105_s26, %s1101_s25 }
   0x6   : > { %p177_p1 = scmp.eq.s32.totalorder %s176_s9, 0  ;;  %p190_p2 = scmp.eq.s32.totalorder %s1176_s28, 1 }
   0x7   : > { %p195_p3 = scmp.ne.s32.totalorder %s1101_s25, %s1097_s24  ;;  %p196_p4 = scmp.eq.s32.totalorder %s925_s29, 1 }
   0x8   : > { %s1191_s10 = scalar_select %p177_p1, %s1105_s26, %s179_s8  }
   0x9   : > { %p1193_p5 = por %p190_p2, %p189_p0  ;;  %p1197_p6 = por %p196_p4, %p195_p3 }
   0xa   : > { %p928_p7 = scmp.ge.s32.totalorder %s1109_s27, 1  ;;  %p249_p8 = scmp.lt.s32.totalorder %s1109_s27, 3 }
   0xc   : > { %p250_p9 = pnand %p928_p7, %p249_p8 }
   0xd   : > { %s930_s13 = sshll.u32 (!%p250_p9), %s1176_s28, 5  ;;  %v1207_v0 = vld [vmem:[%s1430_s1] sm:$0xff] (!%p250_p9)   ;;  %vm429_vm0 = vcmask (!%p250_p9), 130048   ;;  %v1111_v1 = vmov (!%p250_p9), 0   ;;  %v363_v3 = vld [vmem:[%s1431_s2 + $0x10] sm:$0xff] (!%p250_p9)  ;;  %v362_v4 = vld [vmem:[%s1431_s2 + $0x8] sm:$0xff] (!%p250_p9) }
   0xe   : > { %253 = sbr.rel (%p250_p9) target bundleno = 837 (0x345), region = 48  ;;  %p290_p10 = scmp.lt.s32.totalorder (!%p250_p9), %s930_s13, 47  ;;  %979 = vmatprep.mubr.msk.bf16.mxu0 (!%p250_p9), %vm429_vm0, %v1207_v0  ;;  %1036 = vset.pattern.permute.xlu0 (!%p250_p9), %v1111_v1  ;;  %v361_v2 = vld [vmem:[%s1431_s2] sm:$0xff] (!%p250_p9)  ;;  %v364_v5 = vld [vmem:[%s1431_s2 + $0x18] sm:$0xff] (!%p250_p9)  ;;  %v366_v19 = vld [vmem:[%s1431_s2 + $0x28] sm:$0xff] (!%p250_p9)  ;;  %vm663_vm1 = vcmask (!%p250_p9), 523264  }
   0xf   : > { %1037 = vset.pattern.permute.xlu1 (!%p250_p9), %v1111_v1  ;;  %708 = vmatprep.mubr.bf16.mxu1 (!%p250_p9), %v1111_v1  ;;  %v365_v17 = vld [vmem:[%s1431_s2 + $0x20] sm:$0xff] (!%p250_p9)  ;;  %v367_v23 = vld [vmem:[%s1431_s2 + $0x30] sm:$0xff] (!%p250_p9)  ;;  %v368_v24 = vld [vmem:[%s1431_s2 + $0x38] sm:$0xff] (!%p250_p9)  ;;  %s282_s18 = sand.u32 (!%p250_p9), 1, %s1101_s25  }
  0x10   : > { %371 = vperm.xlu0 (!%p250_p9), %1036, %v361_v2   ;;  %381 = vperm.xlu1 (!%p250_p9), %1037, %v363_v3   ;;  %v595_v29 = vld [vmem:[%s1433_s4] sm:$0xff] (!%p250_p9)  ;;  %v596_v30 = vld [vmem:[%s1433_s4 + $0x8] sm:$0xff] (!%p250_p9)  ;;  %v597_v33 = vld [vmem:[%s1433_s4 + $0x10] sm:$0xff] (!%p250_p9)  ;;  %s929_s19 = sshll.u32 (!%p250_p9), %s282_s18, 5 }
  0x11   : > { %v598_v35 = vld [vmem:[%s1433_s4 + $0x18] sm:$0xff] (!%p250_p9)  ;;  %v599_v40 = vld [vmem:[%s1433_s4 + $0x20] sm:$0xff] (!%p250_p9)  ;;  %v600_v41 = vld [vmem:[%s1433_s4 + $0x28] sm:$0xff] (!%p250_p9) }
  0x12   : > { %v601_v45 = vld [vmem:[%s1433_s4 + $0x30] sm:$0xff] (!%p250_p9)  ;;  %v602_v46 = vld [vmem:[%s1433_s4 + $0x38] sm:$0xff] (!%p250_p9)  ;;  %v775_v51 = vld [vmem:[%s1435_s6] sm:$0xff] (!%p250_p9) }
  0x13   : > { %v776_v52 = vld [vmem:[%s1435_s6 + $0x8] sm:$0xff] (!%p250_p9) }
  0x14   : > { %376 = vperm.xlu0 (!%p250_p9), %1036, %v362_v4   ;;  %386 = vperm.xlu1 (!%p250_p9), %1037, %v364_v5  }
  0x15   : > { %s1444_s13 = smov (!%p290_p10, %s930_s13), 47  ;;  %s951_s21 = sshll.u32 (%p1193_p5), %s1176_s28, 1 }
  0x16   : > { %s931_s20 = sshll.u32 %s1444_s13, 3  ;;  %s851_s22 = ssub.s32 (%p1193_p5), 3, %s951_s21 }
  0x17   : > { %s1223_s23 = scalar_lea.vmem %s1429_s0, %s931_s20  ;;  %s1363_s20 = scalar_lea.sflag [#allocation3], %s282_s18 }
  0x18   : > { %v321_v6 = vld [vmem:[%s1223_s23 + $0x80] sm:$0xff]  ;;  %v322_v7 = vld [vmem:[%s1223_s23 + $0x88] sm:$0xff]  ;;  %v323_v11 = vld [vmem:[%s1223_s23 + $0x90] sm:$0xff]  ;;  %391 = vperm.xlu0 %1036, %v365_v17   ;;  %396 = vperm.xlu1 %1037, %v366_v19   ;;  %p852_p11 = scmp.lt.s32.totalorder (%p1193_p5), %s851_s22, 2 }
  0x19   : > { %v305_v8 = vld [vmem:[%s1223_s23] sm:$0xff]  ;;  %v345_v9 = vpack.c.bf16 %v322_v7, %v321_v6  ;;  %v306_v10 = vld [vmem:[%s1223_s23 + $0x8] sm:$0xff]  ;;  %v324_v12 = vld [vmem:[%s1223_s23 + $0x98] sm:$0xff] }
  0x1a   : > { %v337_v13 = vpack.c.bf16 %v306_v10, %v305_v8  ;;  %v346_v14 = vpack.c.bf16 %v324_v12, %v323_v11  ;;  %v307_v15 = vld [vmem:[%s1223_s23 + $0x10] sm:$0xff]  ;;  %v308_v16 = vld [vmem:[%s1223_s23 + $0x18] sm:$0xff]  ;;  %v325_v21 = vld [vmem:[%s1223_s23 + $0xa0] sm:$0xff] }
  0x1b   : > { %987 = vmatprep.subr.msk.bf16.mxu0 %vm429_vm0, %v345_v9  ;;  %v338_v20 = vpack.c.bf16 %v308_v16, %v307_v15  ;;  %v326_v22 = vld [vmem:[%s1223_s23 + $0xa8] sm:$0xff]  ;;  %v309_v27 = vld [vmem:[%s1223_s23 + $0x20] sm:$0xff]  ;;  %v327_v31 = vld [vmem:[%s1223_s23 + $0xb0] sm:$0xff] }
  0x1c   : > { %v443_v18 = vsel %vm429_vm0, %v337_v13, 0  ;;  %v347_v26 = vpack.c.bf16 %v326_v22, %v325_v21  ;;  %401 = vperm.xlu0 %1036, %v367_v23   ;;  %v310_v28 = vld [vmem:[%s1223_s23 + $0x28] sm:$0xff]  ;;  %406 = vperm.xlu1 %1037, %v368_v24   ;;  %v328_v32 = vld [vmem:[%s1223_s23 + $0xb8] sm:$0xff]  ;;  %v311_v38 = vld [vmem:[%s1223_s23 + $0x30] sm:$0xff] }
  0x1d   : > { %964 = vmatpush3.bf16.xpose.msra.mxu0 %v443_v18  ;;  %v446_v25 = vsel %vm429_vm0, %v338_v20, 0  ;;  %v339_v34 = vpack.c.bf16 %v310_v28, %v309_v27  ;;  %v348_v37 = vpack.c.bf16 %v328_v32, %v327_v31  ;;  %v312_v39 = vld [vmem:[%s1223_s23 + $0x38] sm:$0xff]  ;;  %v329_v43 = vld [vmem:[%s1223_s23 + $0xc0] sm:$0xff]  ;;  %v330_v44 = vld [vmem:[%s1223_s23 + $0xc8] sm:$0xff] }
  0x1e   : > { %988 = vmatprep.subr.msk.bf16.mxu0 %vm429_vm0, %v346_v14  ;;  %v340_v42 = vpack.c.bf16 %v312_v39, %v311_v38  ;;  %v349_v48 = vpack.c.bf16 %v330_v44, %v329_v43  ;;  %v313_v49 = vld [vmem:[%s1223_s23 + $0x40] sm:$0xff]  ;;  %v314_v50 = vld [vmem:[%s1223_s23 + $0x48] sm:$0xff]  ;;  %v331_v54 = vld [vmem:[%s1223_s23 + $0xd0] sm:$0xff] }
  0x1f   : > { %v449_v36 = vsel %vm429_vm0, %v339_v34, 0  ;;  %v341_v53 = vpack.c.bf16 %v314_v50, %v313_v49  ;;  %v332_v55 = vld [vmem:[%s1223_s23 + $0xd8] sm:$0xff]  ;;  %v315_v58 = vld [vmem:[%s1223_s23 + $0x50] sm:$0xff]  ;;  %v333_v61 = vld [vmem:[%s1223_s23 + $0xe0] sm:$0xff] }
  0x20   : > { %605 = vperm.xlu0 %1036, %v595_v29   ;;  %610 = vperm.xlu1 %1037, %v596_v30   ;;  %v452_v47 = vsel %vm429_vm0, %v340_v42, 0  ;;  %v350_v57 = vpack.c.bf16 %v332_v55, %v331_v54  ;;  %v316_v59 = vld [vmem:[%s1223_s23 + $0x58] sm:$0xff]  ;;  %v334_v62 = vld [vmem:[%s1223_s23 + $0xe8] sm:$0xff]  ;;  %v317_v3 = vld [vmem:[%s1223_s23 + $0x60] sm:$0xff] }
  0x21   : > { %v455_v56 = vsel %vm429_vm0, %v341_v53, 0  ;;  %v342_v60 = vpack.c.bf16 %v316_v59, %v315_v58  ;;  %v351_v2 = vpack.c.bf16 %v334_v62, %v333_v61  ;;  %v318_v4 = vld [vmem:[%s1223_s23 + $0x68] sm:$0xff]  ;;  %v335_v6 = vld [vmem:[%s1223_s23 + $0xf0] sm:$0xff]  ;;  %v336_v7 = vld [vmem:[%s1223_s23 + $0xf8] sm:$0xff] }
  0x22   : > { %v343_v5 = vpack.c.bf16 %v318_v4, %v317_v3  ;;  %v352_v9 = vpack.c.bf16 %v336_v7, %v335_v6  ;;  %v319_v10 = vld [vmem:[%s1223_s23 + $0x70] sm:$0xff]  ;;  %v320_v11 = vld [vmem:[%s1223_s23 + $0x78] sm:$0xff]  ;;  %v1039_v14 = vld [vmem:[%s1430_s1 + $0x8] sm:$0xff]   ;;  %s284_s23 = scalar_lea.vmem [#allocation2], %s929_s19 }
  0x23   : > { %v458_v63 = vsel %vm429_vm0, %v342_v60, 0  ;;  %v344_v12 = vpack.c.bf16 %v320_v11, %v319_v10  ;;  %v1040_v15 = vld [vmem:[%s1430_s1 + $0x10] sm:$0xff]   ;;  %v1041_v16 = vld [vmem:[%s1430_s1 + $0x18] sm:$0xff]  }
  0x24   : > { %615 = vperm.xlu0 %1036, %v597_v33   ;;  %620 = vperm.xlu1 %1037, %v598_v35   ;;  %v461_v8 = vsel %vm429_vm0, %v343_v5, 0 }
  0x25   : > { %966 = vmatpush3.bf16.xpose.msra.mxu0 %v446_v25  ;;  %v464_v13 = vsel %vm429_vm0, %v344_v12, 0 }
  0x26   : > { %989 = vmatprep.subr.msk.bf16.mxu0 %vm429_vm0, %v347_v26 }
  0x28   : > { %625 = vperm.xlu0 %1036, %v599_v40   ;;  %630 = vperm.xlu1 %1037, %v600_v41  }
  0x2c   : > { %635 = vperm.xlu0 %1036, %v601_v45   ;;  %640 = vperm.xlu1 %1037, %v602_v46  }
  0x2d   : > { %968 = vmatpush3.bf16.xpose.msra.mxu0 %v449_v36 }
  0x2e   : > { %990 = vmatprep.subr.msk.bf16.mxu0 %vm429_vm0, %v348_v37 }
  0x30   : > { %779 = vperm.xlu0 %1036, %v775_v51   ;;  %784 = vperm.xlu1 %1037, %v776_v52  }
  0x35   : > { %970 = vmatpush3.bf16.xpose.msra.mxu0 %v452_v47 }
  0x36   : > { %991 = vmatprep.subr.msk.bf16.mxu0 %vm429_vm0, %v349_v48 }
  0x3d   : > { %972 = vmatpush3.bf16.xpose.msra.mxu0 %v455_v56 }
  0x3e   : > { %992 = vmatprep.subr.msk.bf16.mxu0 %vm429_vm0, %v350_v57 }
  0x45   : > { %974 = vmatpush3.bf16.xpose.msra.mxu0 %v458_v63 }
  0x46   : > { %993 = vmatprep.subr.msk.bf16.mxu0 %vm429_vm0, %v351_v2 }
  0x4d   : > { %976 = vmatpush3.bf16.xpose.msra.mxu0 %v461_v8 }
  0x4e   : > { %994 = vmatprep.subr.msk.bf16.mxu0 %vm429_vm0, %v352_v9 }
  0x55   : > { %978 = vmatpush3.bf16.xpose.msra.mxu0 %v464_v13 }
  0x5c   : > { %980 = vmatmul.mubr.msk.bf16.vlgmr.msra.gmra.mrb[0].mxu0 %vm429_vm0, %v1207_v0 }
  0x5d   : > { %981 = vmatprep.mubr.msk.bf16.mxu0 %vm429_vm0, %v1039_v14 }
  0x64   : > { %982 = vmatmul.mubr.msk.bf16.gmra.mrb[4].mxu0 %vm429_vm0, %v1039_v14 }
  0x65   : > { %983 = vmatprep.mubr.msk.bf16.mxu0 %vm429_vm0, %v1040_v15 }
  0x6c   : > { %984 = vmatmul.mubr.msk.bf16.gmra.mrb[8].mxu0 %vm429_vm0, %v1040_v15 }
  0x6d   : > { %985 = vmatprep.mubr.msk.bf16.mxu0 %vm429_vm0, %v1041_v16 }
  0x74   : > { %986 = vmatmul.mubr.msk.bf16.gmra.mrb[12].mxu0 %vm429_vm0, %v1041_v16 }
  0x8f   : > { %v372_v0 = vpop.permute.xlu0 %371  ;;  %v382_v25 = vpop.permute.xlu1 %381 }
  0x93   : > { %v377_v20 = vpop.permute.xlu0 %376  ;;  %v387_v36 = vpop.permute.xlu1 %386 }
  0x97   : > { %v392_v47 = vpop.permute.xlu0 %391  ;;  %v397_v52 = vpop.permute.xlu1 %396 }
  0x9b   : > { %v402_v63 = vpop.permute.xlu0 %401  ;;  %v407_v6 = vpop.permute.xlu1 %406 }
 0x12f   : > { %v524_v17 = vpop.f32.mrb[0].mxu0 }
 0x130   : > { %v525_v18 = vadd.f32 %v524_v17, %v372_v0  ;;  %v526_v19 = vpop.f32.mrb[1].mxu0  ;;  %v1042_v17 = vld [vmem:[%s1432_s3] sm:$0xff]  }
 0x131   : > { %v527_v21 = vadd.f32 %v526_v19, %v372_v0  ;;  %v528_v22 = vpop.f32.mrb[2].mxu0  ;;  %v1044_v19 = vld [vmem:[%s1432_s3 + $0x10] sm:$0xff]  }
 0x132   : > { %v529_v23 = vadd.f32 %v528_v22, %v377_v20  ;;  %v530_v24 = vpop.f32.mrb[3].mxu0  ;;  %v563_v27 = vmax.f32 %v525_v18, 0.0  ;;  %v1043_v18 = vld [vmem:[%s1432_s3 + $0x8] sm:$0xff]  }
 0x133   : > { %v531_v26 = vadd.f32 %v530_v24, %v377_v20  ;;  %v564_v29 = vmax.f32 %v527_v21, 0.0  ;;  %v1045_v20 = vld [vmem:[%s1432_s3 + $0x18] sm:$0xff]   ;;  %v606_v21 = vpop.permute.xlu0 %605 }
 0x134   : > { %v565_v28 = vmax.f32 %v529_v23, 0.0 }
 0x135   : > { %v566_v30 = vmax.f32 %v531_v26, 0.0 }
 0x136   : > { %v587_v31 = vpack.c.bf16 %v565_v28, %v563_v27 }
 0x137   : > { %v534_v32 = vpop.f32.mrb[4].mxu0  ;;  %v588_v33 = vpack.c.bf16 %v566_v30, %v564_v29 }
 0x138   : > { %v535_v34 = vadd.f32 %v534_v32, %v382_v25  ;;  %v536_v35 = vpop.f32.mrb[5].mxu0 }
 0x139   : > { %v537_v37 = vadd.f32 %v536_v35, %v382_v25  ;;  %v538_v38 = vpop.f32.mrb[6].mxu0  ;;  %676 = vmatprep.subr.bf16.mxu1 %v588_v33  ;;  %v611_v25 = vpop.permute.xlu1 %610 }
 0x13a   : > { %v539_v39 = vadd.f32 %v538_v38, %v387_v36  ;;  %v540_v40 = vpop.f32.mrb[7].mxu0  ;;  %677 = vmatpush1.bf16.msra.mxu1 %v587_v31  ;;  %v567_v42 = vmax.f32 %v535_v34, 0.0 }
 0x13b   : > { %v541_v41 = vadd.f32 %v540_v40, %v387_v36  ;;  %v568_v44 = vmax.f32 %v537_v37, 0.0  ;;  %v616_v36 = vpop.permute.xlu0 %615 }
 0x13c   : > { %v569_v43 = vmax.f32 %v539_v39, 0.0 }
 0x13d   : > { %v570_v45 = vmax.f32 %v541_v41, 0.0  ;;  %v621_v40 = vpop.permute.xlu1 %620 }
 0x13e   : > { %v589_v46 = vpack.c.bf16 %v569_v43, %v567_v42 }
 0x13f   : > { %v590_v48 = vpack.c.bf16 %v570_v45, %v568_v44  ;;  %v544_v49 = vpop.f32.mrb[8].mxu0 }
 0x140   : > { %v545_v50 = vadd.f32 %v544_v49, %v392_v47  ;;  %v546_v51 = vpop.f32.mrb[9].mxu0 }
 0x141   : > { %v547_v53 = vadd.f32 %v546_v51, %v392_v47  ;;  %v548_v54 = vpop.f32.mrb[10].mxu0  ;;  %678 = vmatprep.subr.bf16.mxu1 %v590_v48  ;;  %v626_v51 = vpop.permute.xlu0 %625 }
 0x142   : > { %v549_v55 = vadd.f32 %v548_v54, %v397_v52  ;;  %v550_v56 = vpop.f32.mrb[11].mxu0  ;;  %679 = vmatpush1.bf16.msra.mxu1 %v589_v46  ;;  %v571_v58 = vmax.f32 %v545_v50, 0.0 }
 0x143   : > { %v551_v57 = vadd.f32 %v550_v56, %v397_v52  ;;  %v572_v60 = vmax.f32 %v547_v53, 0.0  ;;  %v631_v56 = vpop.permute.xlu1 %630 }
 0x144   : > { %v573_v59 = vmax.f32 %v549_v55, 0.0 }
 0x145   : > { %v574_v61 = vmax.f32 %v551_v57, 0.0 }
 0x146   : > { %v591_v62 = vpack.c.bf16 %v573_v59, %v571_v58 }
 0x147   : > { %v592_v2 = vpack.c.bf16 %v574_v61, %v572_v60  ;;  %v554_v3 = vpop.f32.mrb[12].mxu0 }
 0x148   : > { %v555_v4 = vadd.f32 %v554_v3, %v402_v63  ;;  %v556_v5 = vpop.f32.mrb[13].mxu0 }
 0x149   : > { %v557_v7 = vadd.f32 %v556_v5, %v402_v63  ;;  %v558_v8 = vpop.f32.mrb[14].mxu0  ;;  %680 = vmatprep.subr.bf16.mxu1 %v592_v2  ;;  %v636_v5 = vpop.permute.xlu0 %635 }
 0x14a   : > { %v559_v9 = vadd.f32 %v558_v8, %v407_v6  ;;  %v560_v10 = vpop.f32.mrb[15].mxu0  ;;  %681 = vmatpush1.bf16.msra.mxu1 %v591_v62  ;;  %v575_v12 = vmax.f32 %v555_v4, 0.0 }
 0x14b   : > { %v561_v11 = vadd.f32 %v560_v10, %v407_v6  ;;  %v576_v14 = vmax.f32 %v557_v7, 0.0  ;;  %v641_v10 = vpop.permute.xlu1 %640 }
 0x14c   : > { %v577_v13 = vmax.f32 %v559_v9, 0.0 }
 0x14d   : > { %v578_v15 = vmax.f32 %v561_v11, 0.0 }
 0x14e   : > { %v593_v16 = vpack.c.bf16 %v577_v13, %v575_v12 }
 0x14f   : > { %v594_v0 = vpack.c.bf16 %v578_v15, %v576_v14 }
 0x151   : > { %682 = vmatprep.subr.bf16.mxu1 %v594_v0 }
 0x152   : > { %683 = vmatpush1.bf16.msra.mxu1 %v593_v16 }
 0x155   : > { %944 = vmatmul.mubr.msk.bf16.vlgmr.msra.gmra.mrb[0].mxu1 %vm663_vm1, %v1042_v17 }
 0x156   : > { %718 = vmatprep.mubr.bf16.mxu1 %v1111_v1 }
 0x15d   : > { %945 = vmatmul.mubr.msk.bf16.gmra.mrb[4].mxu1 %vm663_vm1, %v1043_v18 }
 0x15e   : > { %728 = vmatprep.mubr.bf16.mxu1 %v1111_v1 }
 0x165   : > { %946 = vmatmul.mubr.msk.bf16.gmra.mrb[8].mxu1 %vm663_vm1, %v1044_v19 }
 0x166   : > { %738 = vmatprep.mubr.bf16.mxu1 %v1111_v1 }
 0x16d   : > { %947 = vmatmul.mubr.msk.bf16.gmra.mrb[12].mxu1 %vm663_vm1, %v1045_v20 }
 0x16e   : > { %827 = vmatprep.mubr.bf16.mxu1 %v1111_v1 }
 0x228   : > { %v710_v22 = vpop.f32.mrb[0].mxu1 }
 0x229   : > { %v711_v23 = vadd.f32 %v710_v22, %v606_v21  ;;  %v712_v24 = vpop.f32.mrb[1].mxu1  ;;  %v780_v22 = vpop.permute.xlu0 %779 }
 0x22a   : > { %v713_v26 = vadd.f32 %v712_v24, %v606_v21  ;;  %v714_v27 = vpop.f32.mrb[2].mxu1  ;;  %v1046_v21 = vld [vmem:[%s1434_s5] sm:$0xff]  }
 0x22b   : > { %v715_v28 = vadd.f32 %v714_v27, %v611_v25  ;;  %v716_v29 = vpop.f32.mrb[3].mxu1  ;;  %v749_v31 = vmax.f32 %v711_v23, 0.0 }
 0x22c   : > { %v717_v30 = vadd.f32 %v716_v29, %v611_v25  ;;  %v750_v33 = vmax.f32 %v713_v26, 0.0  ;;  %v785_v26 = vpop.permute.xlu1 %784 }
 0x22d   : > { %v751_v32 = vmax.f32 %v715_v28, 0.0 }
 0x22e   : > { %v752_v34 = vmax.f32 %v717_v30, 0.0 }
 0x22f   : > { %v767_v35 = vpack.c.bf16 %v751_v32, %v749_v31 }
 0x230   : > { %v768_v37 = vpack.c.bf16 %v752_v34, %v750_v33  ;;  %v720_v38 = vpop.f32.mrb[4].mxu1 }
 0x231   : > { %v721_v39 = vadd.f32 %v720_v38, %v616_v36  ;;  %v722_v1 = vpop.f32.mrb[5].mxu1 }
 0x232   : > { %v723_v41 = vadd.f32 %v722_v1, %v616_v36  ;;  %v724_v42 = vpop.f32.mrb[6].mxu1  ;;  %795 = vmatprep.subr.bf16.mxu1 %v768_v37 }
 0x233   : > { %v725_v43 = vadd.f32 %v724_v42, %v621_v40  ;;  %v726_v44 = vpop.f32.mrb[7].mxu1  ;;  %796 = vmatpush1.bf16.msra.mxu1 %v767_v35  ;;  %v753_v46 = vmax.f32 %v721_v39, 0.0 }
 0x234   : > { %v727_v45 = vadd.f32 %v726_v44, %v621_v40  ;;  %v754_v48 = vmax.f32 %v723_v41, 0.0 }
 0x235   : > { %v755_v47 = vmax.f32 %v725_v43, 0.0 }
 0x236   : > { %v756_v49 = vmax.f32 %v727_v45, 0.0 }
 0x237   : > { %v769_v50 = vpack.c.bf16 %v755_v47, %v753_v46 }
 0x238   : > { %v770_v52 = vpack.c.bf16 %v756_v49, %v754_v48  ;;  %v730_v53 = vpop.f32.mrb[8].mxu1 }
 0x239   : > { %v731_v54 = vadd.f32 %v730_v53, %v626_v51  ;;  %v732_v55 = vpop.f32.mrb[9].mxu1 }
 0x23a   : > { %v733_v57 = vadd.f32 %v732_v55, %v626_v51  ;;  %v734_v58 = vpop.f32.mrb[10].mxu1  ;;  %797 = vmatprep.subr.bf16.mxu1 %v770_v52 }
 0x23b   : > { %v735_v59 = vadd.f32 %v734_v58, %v631_v56  ;;  %v736_v60 = vpop.f32.mrb[11].mxu1  ;;  %798 = vmatpush1.bf16.msra.mxu1 %v769_v50  ;;  %v757_v62 = vmax.f32 %v731_v54, 0.0 }
 0x23c   : > { %v737_v61 = vadd.f32 %v736_v60, %v631_v56  ;;  %v758_v2 = vmax.f32 %v733_v57, 0.0 }
 0x23d   : > { %v759_v63 = vmax.f32 %v735_v59, 0.0 }
 0x23e   : > { %v760_v3 = vmax.f32 %v737_v61, 0.0 }
 0x23f   : > { %v771_v4 = vpack.c.bf16 %v759_v63, %v757_v62 }
 0x240   : > { %v772_v6 = vpack.c.bf16 %v760_v3, %v758_v2  ;;  %v740_v7 = vpop.f32.mrb[12].mxu1 }
 0x241   : > { %v741_v8 = vadd.f32 %v740_v7, %v636_v5  ;;  %v742_v9 = vpop.f32.mrb[13].mxu1 }
 0x242   : > { %v743_v11 = vadd.f32 %v742_v9, %v636_v5  ;;  %v744_v12 = vpop.f32.mrb[14].mxu1  ;;  %799 = vmatprep.subr.bf16.mxu1 %v772_v6 }
 0x243   : > { %v745_v13 = vadd.f32 %v744_v12, %v641_v10  ;;  %v746_v14 = vpop.f32.mrb[15].mxu1  ;;  %800 = vmatpush1.bf16.msra.mxu1 %v771_v4  ;;  %v761_v16 = vmax.f32 %v741_v8, 0.0 }
 0x244   : > { %v747_v15 = vadd.f32 %v746_v14, %v641_v10  ;;  %v762_v17 = vmax.f32 %v743_v11, 0.0 }
 0x245   : > { %v763_v0 = vmax.f32 %v745_v13, 0.0 }
 0x246   : > { %v764_v18 = vmax.f32 %v747_v15, 0.0 }
 0x247   : > { %v773_v19 = vpack.c.bf16 %v763_v0, %v761_v16 }
 0x248   : > { %v774_v20 = vpack.c.bf16 %v764_v18, %v762_v17 }
 0x24a   : > { %801 = vmatprep.subr.bf16.mxu1 %v774_v20 }
 0x24b   : > { %802 = vmatpush1.bf16.msra.mxu1 %v773_v19 }
 0x24e   : > { %949 = vmatmul.mubr.msk.bf16.vlgmr.msra.gmra.mrb[16].mxu1 %vm663_vm1, %v1046_v21 }
 0x321   : > { %v829_v23 = vpop.f32.mrb[16].mxu1  ;;  %849 = sbr.rel (!%p1193_p5) target bundleno = 837 (0x345), region = 52 }
 0x322   : > { %v830_v24 = vadd.f32 %v829_v23, %v780_v22  ;;  %v831_v25 = vpop.f32.mrb[17].mxu1 }
 0x323   : > { %v832_v27 = vadd.f32 %v831_v25, %v780_v22  ;;  %v833_v28 = vpop.f32.mrb[18].mxu1 }
 0x324   : > { %838 = vst [vmem:[%s284_s23] sm:$0xff] %v830_v24  ;;  %v834_v29 = vadd.f32 %v833_v28, %v785_v26  ;;  %v835_v30 = vpop.f32.mrb[19].mxu1 }
 0x325   : > { %839 = vst [vmem:[%s284_s23 + $0x8] sm:$0xff] %v832_v27  ;;  %v836_v31 = vadd.f32 %v835_v30, %v785_v26 }
 0x326   : > { %840 = vst [vmem:[%s284_s23 + $0x10] sm:$0xff] %v834_v29 }
 0x327   : > { %841 = vst [vmem:[%s284_s23 + $0x18] sm:$0xff] %v836_v31 }
 0x328   : > { %s1446_s22 = smov (!%p852_p11, %s851_s22), 2 }
 0x329   : > { %s1371_s29 = sshll.u32 %s1446_s22, 8 }
 0x32a   : > { %s856_s8 = ssub.s32 512, %s1371_s29 }
 0x32b   : > { %857 = vsyncadd %s1363_s20, %s856_s8  ;;  %p953_p12 = scmp.ne.s32.totalorder %s1371_s29, 0  ;;  %s960_s11 = sshll.u32 %s1176_s28, 8 }
 0x32c   : > { %s1380_s14 = scalar_lea.hbm %s1436_s7, %s960_s11  ;;  %s955_s15 = sshll.u32 %s1446_s22, 3 }
 0x32d   : > { %s863_s16 = sshll.u32 %s284_s23, 4  ;;  %s1112_s18 = smov [#allocation2]   ;;  %s1383_s16 = int_to_ptr.vmem [resolvable:$true] %s863_s16 }
 0x32e   : > { %s1047_s17 = scalar_lea.vmem %s1383_s16, %s1371_s29  ;;  %s1051_s19 = sshll.u32 %s1112_s18, 4  ;;  %s1052_s19 = int_to_ptr.vmem [resolvable:$false] %s1051_s19 }
 0x32f   : > { %p1048_p13 = scmp.ne.s32.totalorder %s1383_s16, %s1047_s17  ;;  %s1053_s28 = scalar_lea.vmem %s1052_s19, 1024 }
 0x330   : > { %p1054_p2 = scmp.lt.s32.totalorder %s1383_s16, %s1052_s19  ;;  %p1055_p3 = scmp.lt.s32.totalorder %s1053_s28, %s1047_s17 }
 0x331   : > { %p1049_p0 = pnand %p1048_p13, %p953_p12 }
 0x332   : > { %p1056_p4 = por %p1055_p3, %p1054_p2 }
 0x333   : > { %p1050_p1 = pneg %p1049_p0 }
 0x335   : > { %p1057_p5 = pnand %p1056_p4, %p1050_p1 }
 0x337   : > { %1060 = shalt.err (!%p1057_p5)
}
 0x338   : > { %s1061_s23 = scalar_lea.hbm %s1380_s14, %s1371_s29  ;;  %s1065_s11 = scalar_lea.hbm %s1436_s7, 768 }
 0x339   : > { %p1062_p7 = scmp.ne.s32.totalorder %s1380_s14, %s1061_s23  ;;  %p1066_p10 = scmp.lt.u32.totalorder %s1380_s14, %s1436_s7 }
 0x33a   : > { %p1067_p11 = scmp.lt.u32.totalorder %s1065_s11, %s1061_s23  ;;  %p1069_p0 = scmp.lt.u32.totalorder %s1061_s23, %s1380_s14 }
 0x33b   : > { %p1063_p8 = pnand %p1062_p7, %p953_p12 }
 0x33c   : > { %p1068_p13 = por %p1067_p11, %p1066_p10 }
 0x33d   : > { %p1064_p9 = pneg %p1063_p8 }
 0x33e   : > { %p1070_p1 = por %p1069_p0, %p1068_p13 }
 0x340   : > { %p1071_p2 = pnand %p1070_p1, %p1064_p9 }
 0x342   : > { %1074 = shalt.err (!%p1071_p2)
}
 0x343   : > { %s1113_s17 = smov 256   ;;  %s1114_s18 = smov 384  }
 0x344   : > { %869 = dma.vmem_to_hbm [thread:$0]  (%p953_p12), %s1383_s16, %s1371_s29, %s1380_s14, %s1363_s20, %s1113_s17, %s1114_s18, %s955_s15  }
 0x345 PF: > { %p1000_p3 = scmp.ge.s32.totalorder %s1109_s27, 2  ;;  %s878_s19 = sand.u32 1, %s1097_s24  }
 0x346   : > { %s879_s28 = scalar_lea.sflag [#allocation3], %s878_s19 }
 0x347   : > { %p997_p4 = pnand %p1000_p3, %p1197_p6 }
 0x349   : > { %1092 = dma.done.wait (!%p997_p4), %s879_s28, 512  }
 0x34a   : > { %1094 = vsyncadd (!%p997_p4), %s879_s28, 4294966784  ;;  %p17_p5 = scmp.ge.s32.totalorder %s1180_s30, 4   ;;  %s1439_s24 = smov %s1101_s25 }
 0x34b   : > { %s1440_s25 = smov %s1105_s26  ;;  %s1441_s26 = smov %s1191_s10 }
 0x34c   : > { %s1442_s27 = smov %s1180_s30  ;;  %19 = sbr.rel (!%p17_p5) target bundleno = 3 (0x3), region = 83 }
 0x353   :  { %884 = vsyncpa [#allocation3], 1 }
 0x354   :  { %886 = vsyncpa [#allocation3 + $0x1], 1 }

</bundles_post_ra>
